<compile_context>
chip_gen: v7x
topology: tpu7x:2x2x1
jax: 0.10.0
libtpu: 0.0.40
codegen_flags: <defaults>
</compile_context>

<pallas_src>
import math

import jax
import jax.numpy as jnp
from jax.experimental import pallas as pl
from jax.experimental.pallas import tpu as pltpu

R = 4                      # LoRA rank (fixed in the module)
LORA_ALPHA = 1
SCALING = LORA_ALPHA / R   # 0.25

VMEM_PER_TC_FLOOR = 64 << 20   # v7x per-TensorCore VMEM — worst case across gens


# ---------------------------------------------------------------------------
# Kernels
# ---------------------------------------------------------------------------
def _lora_kernel(x_ref, a_ref, bt_ref, o_ref):
    # x_ref  : (tm, d_in)   input row tile
    # a_ref  : (r, d_in)    full lora_A (lane-dense, resident across the grid)
    # bt_ref : (r, tn)      lora_B.T slice (lane-dense)
    # o_ref  : (tm, tn)     output tile
    x = x_ref[...]
    a = a_ref[...]
    # x @ A.T via dot_general contracting the last (lane) dims of both operands:
    # no explicit transpose / relayout inside the kernel body.
    tmp = jax.lax.dot_general(
        x, a, (((1,), (1,)), ((), ())),
        preferred_element_type=jnp.float32)                  # (tm, r), f32 acc
    # Scale the rank-r intermediate (d_out/r fewer multiplies than scaling the
    # output) and drop back to the native dtype so the second matmul runs as a
    # single native (e.g. bf16 x bf16 -> f32) MXU pass instead of f32 x f32.
    tmp = (tmp * SCALING).astype(x.dtype)
    out = jnp.dot(tmp, bt_ref[...],
                  preferred_element_type=jnp.float32)        # (tm, tn)
    o_ref[...] = out.astype(o_ref.dtype)


def _lora_acc_kernel(x_ref, a_ref, bt_ref, yb_ref, o_ref):
    # Same as _lora_kernel plus a fused residual add into the aliased output
    # buffer (P8: input_output_aliases) — saves one (M, d_out) HBM round trip.
    x = x_ref[...]
    a = a_ref[...]
    tmp = jax.lax.dot_general(
        x, a, (((1,), (1,)), ((), ())),
        preferred_element_type=jnp.float32)
    tmp = (tmp * SCALING).astype(x.dtype)
    out = jnp.dot(tmp, bt_ref[...], preferred_element_type=jnp.float32)
    o_ref[...] = yb_ref[...] + out.astype(o_ref.dtype)


# ---------------------------------------------------------------------------
# Wrapper helpers
# ---------------------------------------------------------------------------
def _round_up(x, m):
    return ((x + m - 1) // m) * m


def _vmem_capacity_bytes():
    """Best-effort VMEM query, clamped to the per-TensorCore worst case.

    If get_tpu_info() reports a per-chip figure (e.g. 128 MiB on v7x, which has
    64 MiB per TC), trusting it blindly would over-subscribe VMEM; clamping to
    64 MiB is safe on every generation and still plenty for tm <= 1024 tiles.
    """
    cap = None
    try:
        cap = getattr(pltpu.get_tpu_info(), "vmem_capacity_bytes", None)
    except Exception:
        cap = None
    if not cap:
        cap = VMEM_PER_TC_FLOOR
    return int(min(int(cap), VMEM_PER_TC_FLOOR))


def _choose_tiles(M, d_in, d_out_pad, elem_bytes, budget, n_out_streams):
    """Pick (tm, tn).

    tm: largest M tile (multiple of 8, capped at 1024) whose double-buffered
        streaming tiles (x + out [+ y_base]) fit `budget`.
    tn: full padded d_out, unless that would force tm below ~512 rows, in which
        case d_out is tiled in 128-multiples (<=512) first — the x tile stays
        resident across the d_out axis, so extra j steps only re-DMA the tiny
        (r, tn) bT slice.
    """
    def tm_for(tn):
        per_row = 2 * elem_bytes * (d_in + n_out_streams * tn)
        tm = budget // max(per_row, 1)
        return int(max(8, min(1024, (tm // 8) * 8)))

    tn = d_out_pad
    tm = tm_for(tn)
    if tm < 512 and d_out_pad > 512:
        tn_max = (budget // (2 * 512 * elem_bytes) - d_in) // max(n_out_streams, 1)
        tn = int(max(128, min(512, (tn_max // 128) * 128)))
        tn = min(tn, d_out_pad)
        tm = tm_for(tn)
    tm = min(tm, _round_up(M, 8))
    return tm, tn


# ---------------------------------------------------------------------------
# Public entry point
# ---------------------------------------------------------------------------
def lora_forward(x, lora_A, lora_B, y_base=None):
    """x: (..., input_dim) -> (..., output_dim); same math as the PyTorch module.

    If y_base (..., output_dim) is given, returns y_base + lora(x) with the add
    fused into the kernel epilogue via input_output_aliases.
    """
    orig_shape = x.shape
    d_in = orig_shape[-1]
    d_out, r = lora_B.shape
    out_dtype = x.dtype
    has_base = y_base is not None

    x2d = x.reshape(-1, d_in)
    M = x2d.shape[0]

    elem_bytes = jnp.dtype(x.dtype).itemsize
    cap = _vmem_capacity_bytes()
    vmem_limit = int(min(cap - (8 << 20), 56 << 20))   # explicit headroom < 64 MiB
    budget = vmem_limit - (8 << 20)                    # for the streamed tiles

    n_out_streams = 2 if has_base else 1
    d_out_128 = _round_up(d_out, 128)                  # lane-dense output stores
    tm, tn = _choose_tiles(M, d_in, d_out_128, elem_bytes, budget, n_out_streams)

    M_pad = _round_up(M, tm)
    d_out_pad = _round_up(d_out_128, tn)

    if M_pad != M:
        x2d = jnp.pad(x2d, ((0, M_pad - M), (0, 0)))

    # One-time wrapper-side layout work: cast params to the activation dtype and
    # pre-transpose lora_B -> (r, d_out_pad) so both matmul operands are
    # lane-dense with no `.T` in the kernel body.
    a_mat = lora_A.astype(x.dtype)
    bT = lora_B.T.astype(x.dtype)
    if d_out_pad != d_out:
        bT = jnp.pad(bT, ((0, 0), (0, d_out_pad - d_out)))

    grid = (M_pad // tm, d_out_pad // tn)

    x_spec = pl.BlockSpec((tm, d_in), lambda i, j: (i, 0))   # resident across j
    a_spec = pl.BlockSpec((r, d_in), lambda i, j: (0, 0))    # full lora_A
    b_spec = pl.BlockSpec((r, tn), lambda i, j: (0, j))      # lora_B.T slice
    o_spec = pl.BlockSpec((tm, tn), lambda i, j: (i, j))

    # M ("parallel") is the axis megacore shards on v7x: each TC then reads a
    # disjoint slice of x, the dominant HBM stream. d_out stays "arbitrary".
    cparams = pltpu.CompilerParams(
        dimension_semantics=("parallel", "arbitrary"),
        vmem_limit_bytes=vmem_limit)

    cost = pl.CostEstimate(
        flops=2 * M * r * (d_in + d_out),
        transcendentals=0,
        bytes_accessed=elem_bytes * (M * d_in
                                     + M * d_out * (2 if has_base else 1)
                                     + r * (d_in + d_out)))

    if has_base:
        yb2d = y_base.reshape(-1, d_out).astype(out_dtype)
        if M_pad != M or d_out_pad != d_out:
            yb2d = jnp.pad(yb2d, ((0, M_pad - M), (0, d_out_pad - d_out)))
        out = pl.pallas_call(
            _lora_acc_kernel,
            out_shape=jax.ShapeDtypeStruct((M_pad, d_out_pad), out_dtype),
            grid_spec=pltpu.PrefetchScalarGridSpec(
                num_scalar_prefetch=0,
                grid=grid,
                in_specs=[x_spec, a_spec, b_spec, o_spec],
                out_specs=o_spec),
            compiler_params=cparams,
            cost_estimate=cost,
            input_output_aliases={3: 0},   # y_base buffer reused as the output
        )(x2d, a_mat, bT, yb2d)
    else:
        out = pl.pallas_call(
            _lora_kernel,
            out_shape=jax.ShapeDtypeStruct((M_pad, d_out_pad), out_dtype),
            grid_spec=pltpu.PrefetchScalarGridSpec(
                num_scalar_prefetch=0,
                grid=grid,
                in_specs=[x_spec, a_spec, b_spec],
                out_specs=o_spec),
            compiler_params=cparams,
            cost_estimate=cost,
        )(x2d, a_mat, bT)

    out = out[:M, :d_out]
    return out.reshape(orig_shape[:-1] + (d_out,))


# ---------------------------------------------------------------------------
# Self-test
# ---------------------------------------------------------------------------
if __name__ == "__main__":
    # Small shapes consistent with the module: batch=2, seq=8, dims=32 (M=16).
    batch, seq, d_in, d_out = 2, 8, 32, 32

    key = jax.random.PRNGKey(0)
    kx, ka, kb, kx2, ky = jax.random.split(key, 5)

    x = jax.random.normal(kx, (batch, seq, d_in), dtype=jnp.float32)

    # lora_A: kaiming_uniform_(a=sqrt(5)) -> U(-bound, bound),
    # bound = sqrt(6 / ((1 + a^2) * fan_in)) = sqrt(1 / d_in).
    bound = math.sqrt(1.0 / d_in)
    lora_A = jax.random.uniform(ka, (R, d_in), dtype=jnp.float32,
                                minval=-bound, maxval=bound)
    # Module init zeroes lora_B (trivially-zero output); use small random values
    # so the kernel is exercised non-trivially.
    lora_B = 0.01 * jax.random.normal(kb, (d_out, R), dtype=jnp.float32)

    # 1) Basic f32 path.
    y = jax.block_until_ready(lora_forward(x, lora_A, lora_B))
    y_ref = (x @ lora_A.T @ lora_B.T) * SCALING
    assert y.shape == (batch, seq, d_out)
    assert jnp.allclose(y, y_ref, atol=1e-5, rtol=1e-5)

    # 2) M not a multiple of 8 -> exercises the pad/slice path.
    x2 = jax.random.normal(kx2, (3, 5, d_in), dtype=jnp.float32)  # M = 15
    y2 = jax.block_until_ready(lora_forward(x2, lora_A, lora_B))
    y2_ref = (x2 @ lora_A.T @ lora_B.T) * SCALING
    assert y2.shape == (3, 5, d_out)
    assert jnp.allclose(y2, y2_ref, atol=1e-5, rtol=1e-5)

    # 3) Fused residual-add path (input_output_aliases). Reference is computed
    #    BEFORE the aliasing call.
    y_base = jax.random.normal(ky, (batch, seq, d_out), dtype=jnp.float32)
    y3_ref = y_base + y_ref
    y3 = jax.block_until_ready(lora_forward(x, lora_A, lora_B, y_base=y_base))
    assert y3.shape == (batch, seq, d_out)
    assert jnp.allclose(y3, y3_ref, atol=1e-5, rtol=1e-5)

    # 4) bf16 activation path (previously untested): params are cast to bf16 in
    #    the wrapper, matmuls accumulate in f32 on the MXU.
    xb = x.astype(jnp.bfloat16)
    yb = jax.block_until_ready(lora_forward(xb, lora_A, lora_B))
    yb_ref = (xb.astype(jnp.float32) @ lora_A.T @ lora_B.T) * SCALING
    assert yb.dtype == jnp.bfloat16
    assert jnp.allclose(yb.astype(jnp.float32), yb_ref, atol=5e-4, rtol=5e-2)

    print("KERNEL_OK")
</pallas_src>

<mosaic_0001>
module attributes {stable_mosaic.version = 11 : i64} {
  func.func @_lora_kernel(%arg0: i32, %arg1: i32, %arg2: memref<16x32xf32, #tpu.memory_space<vmem>>, %arg3: memref<4x32xf32, #tpu.memory_space<vmem>>, %arg4: memref<4x128xf32, #tpu.memory_space<vmem>>, %arg5: memref<16x128xf32, #tpu.memory_space<vmem>>) attributes {dimension_semantics = [#tpu.dimension_semantics<parallel>, #tpu.dimension_semantics<arbitrary>], iteration_bounds = array<i64: 1, 1>, scalar_prefetch = 0 : i64, scratch_operands = 0 : i64, tpu.core_type = #tpu.core_type<tc>, window_params = [{transform_indices = @transform_0, window_bounds = array<i64: 16, 32>}, {pipeline_mode = #tpu.pipeline_mode<synchronous>, transform_indices = @transform_1, window_bounds = array<i64: 4, 32>}, {transform_indices = @transform_2, window_bounds = array<i64: 4, 128>}, {transform_indices = @transform_3, window_bounds = array<i64: 16, 128>}]} {
    %c0 = arith.constant 0 : index
    %c0_0 = arith.constant 0 : index
    %0 = vector.load %arg2[%c0, %c0_0] : memref<16x32xf32, #tpu.memory_space<vmem>>, vector<16x32xf32>
    %c0_1 = arith.constant 0 : index
    %c0_2 = arith.constant 0 : index
    %1 = vector.load %arg3[%c0_1, %c0_2] : memref<4x32xf32, #tpu.memory_space<vmem>>, vector<4x32xf32>
    %cst = arith.constant dense<0.000000e+00> : vector<16x4xf32>
    %2 = tpu.matmul %0, %1, %cst {dimension_numbers = #tpu.dot_dimension_numbers<[1], [1], [0], [0], [0, 0, 1, 0], [], []>} : vector<16x32xf32>, vector<4x32xf32>, vector<16x4xf32> -> vector<16x4xf32>
    %cst_3 = arith.constant 2.500000e-01 : f32
    %3 = vector.broadcast %cst_3 : f32 to vector<16x4xf32>
    %4 = arith.mulf %2, %3 : vector<16x4xf32>
    %c0_4 = arith.constant 0 : index
    %c0_5 = arith.constant 0 : index
    %5 = vector.load %arg4[%c0_4, %c0_5] : memref<4x128xf32, #tpu.memory_space<vmem>>, vector<4x128xf32>
    %cst_6 = arith.constant dense<0.000000e+00> : vector<16x128xf32>
    %6 = tpu.matmul %4, %5, %cst_6 {dimension_numbers = #tpu.dot_dimension_numbers<[1], [0], [0], [1], [0, 0, 1, 1], [], []>} : vector<16x4xf32>, vector<4x128xf32>, vector<16x128xf32> -> vector<16x128xf32>
    %c0_7 = arith.constant 0 : index
    %c0_8 = arith.constant 0 : index
    %7 = vector.load %arg5[%c0_7, %c0_8] : memref<16x128xf32, #tpu.memory_space<vmem>>, vector<16x128xf32>
    tpu.vector_store %arg5[%c0_7, %c0_8], %6 {strides = array<i32>} : memref<16x128xf32, #tpu.memory_space<vmem>>, vector<16x128xf32>,
    return
  }
  func.func @transform_0(%arg0: i32, %arg1: i32) -> (i32, i32) {
    %c0_i32 = arith.constant 0 : i32
    %c0_i32_0 = arith.constant 0 : i32
    return %arg0, %c0_i32 : i32, i32
  }
  func.func @transform_1(%arg0: i32, %arg1: i32) -> (i32, i32) {
    %c0_i32 = arith.constant 0 : i32
    %c0_i32_0 = arith.constant 0 : i32
    %c0_i32_1 = arith.constant 0 : i32
    return %c0_i32, %c0_i32_0 : i32, i32
  }
  func.func @transform_2(%arg0: i32, %arg1: i32) -> (i32, i32) {
    %c0_i32 = arith.constant 0 : i32
    %c0_i32_0 = arith.constant 0 : i32
    return %c0_i32, %arg1 : i32, i32
  }
  func.func @transform_3(%arg0: i32, %arg1: i32) -> (i32, i32) {
    %c0_i32 = arith.constant 0 : i32
    return %arg0, %arg1 : i32, i32
  }
}

</mosaic_0001>

<bundles_post_ra>
// kernel: tpu_custom_call.1
= control target key start
LH: loop header
LB: loop body
LE: loop exit
PB: predicated region body
PF: predicated region fallthrough
CT: control target
= control target key end

     0   :  { %8 = vsyncpa [#allocation3], 0  ;;  %s407_s0 = inlined_call_operand.hbm [shape: f32[16,32], index: 0, kind: input, shape index: {}]   ;;  %s408_s1 = inlined_call_operand.hbm [shape: f32[4,32], index: 1, kind: input, shape index: {}]   ;;  %s409_s2 = inlined_call_operand.vmem [shape: f32[4,128], index: 2, kind: input, shape index: {}]   ;;  %s410_s3 = inlined_call_operand.hbm [shape: f32[16,128], index: 3, kind: output, shape index: {}]  }
   0x1   :  { %9 = vsyncpa [#allocation6], 0 }
   0x2   :  { %10 = vsyncpa [#allocation4], 0  ;;  %s337_s12 = smov [#allocation2]   ;;  %s265_s16 = scalar_lea.hbm %s407_s0, 256 }
   0x3   :  { %s16_s13 = sshll.u32 %s337_s12, 4  ;;  %p266_p0 = scmp.ne.s32.totalorder %s407_s0, %s265_s16  ;;  %s17_s13 = int_to_ptr.vmem [resolvable:$true] %s16_s13 }
   0x4   :  { %p269_p1 = scmp.lt.u32.totalorder %s265_s16, %s407_s0 }
   0x6   :  { %p271_p2 = pnand %p269_p1, %p266_p0 }
   0x8   :  { %274 = shalt.err (!%p271_p2)
}
   0x9   :  { %s275_s21 = scalar_lea.vmem %s17_s13, 256  ;;  %p280_p4 = scmp.lt.s32.totalorder %s17_s13, %s17_s13 }
   0xa   :  { %p276_p3 = scmp.ne.s32.totalorder %s17_s13, %s275_s21  ;;  %p281_p5 = scmp.lt.s32.totalorder %s275_s21, %s275_s21 }
   0xc   :  { %p282_p6 = por %p281_p5, %p280_p4 }
   0xe   :  { %p283_p7 = pnand %p282_p6, %p276_p3 }
  0x10   :  { %286 = shalt.err (!%p283_p7)
}
  0x11   :  { %s338_s22 = smov 128   ;;  %s339_s23 = smov 8  }
  0x12   :  { %22 = dma.hbm_to_vmem [thread:$0]  %s407_s0, 256, %s17_s13, [#allocation3], %s338_s22, %s338_s22, %s339_s23  }
  0x13   :  { %s340_s26 = smov [#allocation5]   ;;  %s287_s30 = scalar_lea.hbm %s408_s1, 64 }
  0x14   :  { %s29_s27 = sshll.u32 %s340_s26, 4  ;;  %p288_p8 = scmp.ne.s32.totalorder %s408_s1, %s287_s30  ;;  %s30_s27 = int_to_ptr.vmem [resolvable:$true] %s29_s27 }
  0x15   :  { %p291_p9 = scmp.lt.u32.totalorder %s287_s30, %s408_s1 }
  0x17   :  { %p293_p10 = pnand %p291_p9, %p288_p8 }
  0x19   :  { %296 = shalt.err (!%p293_p10)
}
  0x1a   :  { %s297_s8 = scalar_lea.vmem %s30_s27, 64  ;;  %p302_p12 = scmp.lt.s32.totalorder %s30_s27, %s30_s27 }
  0x1b   :  { %p298_p11 = scmp.ne.s32.totalorder %s30_s27, %s297_s8  ;;  %p303_p13 = scmp.lt.s32.totalorder %s297_s8, %s297_s8 }
  0x1d   :  { %p304_p0 = por %p303_p13, %p302_p12 }
  0x1f   :  { %p305_p1 = pnand %p304_p0, %p298_p11 }
  0x21   :  { %308 = shalt.err (!%p305_p1)
}
  0x22   :  { %32 = dma.hbm_to_vmem [thread:$0]  %s408_s1, 64, %s30_s27, [#allocation6]  }
  0x23   :  { %331 = dma.done.wait [#allocation3], 256  }
  0x24   :  { %332 = vsyncadd [#allocation3], 4294967040 }
  0x25   :  { %333 = dma.done.wait [#allocation6], 64  }
  0x26   :  { %334 = vsyncadd [#allocation6], 4294967232  ;;  %vm44_vm0 = vcmask 261120   ;;  %v43_v0 = vld [vmem:[#allocation5] sm:$0xf]  ;;  %v41_v1 = vld [vmem:[#allocation2] sm:$0xff] }
  0x27   :  { %250 = vmatprep.subr.msk.mxu0 %vm44_vm0, %v43_v0  ;;  %252 = vmatprep.mubr.msk.f32.mxu0 %vm44_vm0, %v41_v1  ;;  %v42_v2 = vld [vmem:[#allocation2 + $0x8] sm:$0xff]  ;;  %v131_v3 = vld [vmem:[%s409_s2] sm:$0xf]  ;;  %vm139_vm1 = vcmask 1043456   ;;  %vm132_vm2 = vcmask 31744   ;;  %s341_s1 = smov [#allocation7]  }
  0x28   :  { %251 = vmatpush3.xpose.msk.msra.mxu0 %vm44_vm0, %v43_v0  ;;  %255 = vmatprep.subr.msk.mxu1 %vm139_vm1, %v131_v3  ;;  %s225_s12 = sshll.u32 %s341_s1, 4  ;;  %s226_s12 = int_to_ptr.vmem [resolvable:$true] %s225_s12 }
  0x29   :  { %256 = vmatpush3.msk.msra.mxu1 %vm139_vm1, %v131_v3  ;;  %s309_s13 = scalar_lea.vmem %s226_s12, 256  ;;  %p314_p3 = scmp.lt.s32.totalorder %s226_s12, %s226_s12 }
  0x2a   :  { %p310_p2 = scmp.ne.s32.totalorder %s226_s12, %s309_s13  ;;  %p315_p4 = scmp.lt.s32.totalorder %s309_s13, %s309_s13 }
  0x2b   :  { %253 = vmatmul.mubr.msk.f32.vlgmr.msra.gmra.mrb[0].mxu0 %vm44_vm0, %v42_v2 }
  0x2c   :  { %p316_p5 = por %p315_p4, %p314_p3 }
  0x2e   :  { %p317_p6 = pnand %p316_p5, %p310_p2 }
  0xfe   :  { %v254_v4 = vpop.f32.mrb[0].mxu0 }
  0xff   :  { %v120_v5 = vpop.f32.mrb[1].mxu0  ;;  %v130_v7 = vmul.f32 0.25, %v254_v4 }
 0x100   :  { %v129_v6 = vmul.f32 0.25, %v120_v5 }
 0x102   :  { %257 = vmatprep.mubr.msk.f32.mxu1 %vm132_vm2, %v129_v6 }
 0x103   :  { %258 = vmatmul.mubr.msk.f32.vlgmr.msra.gmra.mrb[0].mxu1 %vm132_vm2, %v130_v7 }
 0x1d6   :  { %v259_v8 = vpop.f32.mrb[0].mxu1 }
 0x1d7   :  { %219 = vst [vmem:[#allocation7 + $0x8] sm:$0xff] %v259_v8  ;;  %v209_v9 = vpop.f32.mrb[1].mxu1 }
 0x1d8   :  { %218 = vst [vmem:[#allocation7] sm:$0xff] %v209_v9 }
 0x1d9   :  { %320 = shalt.err (!%p317_p6)
}
 0x1da   :  { %s321_s15 = scalar_lea.hbm %s410_s3, 256 }
 0x1db   :  { %p322_p7 = scmp.ne.s32.totalorder %s410_s3, %s321_s15  ;;  %p325_p8 = scmp.lt.u32.totalorder %s321_s15, %s410_s3 }
 0x1dd   :  { %p327_p9 = pnand %p325_p8, %p322_p7 }
 0x1df   :  { %330 = shalt.err (!%p327_p9)
}
 0x1e0   :  { %231 = dma.vmem_to_hbm [thread:$0]  %s226_s12, 256, %s410_s3, [#allocation4], %s338_s22, %s338_s22, %s339_s23  }
 0x1e1   :  { %335 = dma.done.wait [#allocation4], 256  }
 0x1e2   :  { %336 = vsyncadd [#allocation4], 4294967040 }
 0x1e3   :  { %235 = vsyncpa [#allocation3], 1 }
 0x1e4   :  { %236 = vsyncpa [#allocation6], 1 }
 0x1e5   :  { %237 = vsyncpa [#allocation4], 1 }

</bundles_post_ra>
